<compile_context>
chip_gen: v7x
topology: tpu7x:2x2x1
jax: 0.10.0
libtpu: 0.0.40
codegen_flags: <defaults>
</compile_context>

<pallas_src>
import functools
import math

import jax
import jax.numpy as jnp
from jax import lax
from jax.experimental import pallas as pl
from jax.experimental.pallas import tpu as pltpu


def _round_up(x, m):
    return (x + m - 1) // m * m


# ----------------------------------------------------------------------------
# Fused Pallas kernel: image embed (one fused matmul) + normalize + CLIP head
# ----------------------------------------------------------------------------
def _fused_clip_kernel(scale_ref, pooled_ref, txt_t_ref, w_fused_ref, out_ref):
    # Image tower: (tm, patch_dim) bf16 @ (patch_dim, embed) bf16 -> f32 acc.
    img = jnp.dot(pooled_ref[...], w_fused_ref[...],
                  preferred_element_type=jnp.float32)
    # L2 normalize (rsqrt -> EUP slot).
    img = img * lax.rsqrt(jnp.sum(img * img, axis=-1, keepdims=True) + 1e-12)
    # Scaled cosine similarity against pre-normalized, pre-transposed text
    # features: (tm, embed) @ (embed, n_cls_pad) — lane-dense output.
    logits = jnp.dot(img.astype(jnp.bfloat16), txt_t_ref[...],
                     preferred_element_type=jnp.float32)
    out_ref[...] = scale_ref[0, 0] * logits


def fused_clip_call(pooled_patch, txt_t, w_fused, scale_exp, *, max_tm=128):
    B, patch_dim = pooled_patch.shape
    embed, n_cls_pad = txt_t.shape
    # Batch tile: 128 rows when the batch is large, otherwise a sublane-aligned
    # single tile (pad the batch up to it).
    tm = max_tm if B >= max_tm else _round_up(max(B, 1), 8)
    b_pad = _round_up(B, tm)
    if b_pad != B:
        pooled_patch = jnp.pad(pooled_patch, ((0, b_pad - B), (0, 0)))
    scale_arr = jnp.reshape(scale_exp.astype(jnp.float32), (1, 1))

    out = pl.pallas_call(
        _fused_clip_kernel,
        out_shape=jax.ShapeDtypeStruct((b_pad, n_cls_pad), jnp.float32),
        grid_spec=pltpu.PrefetchScalarGridSpec(
            num_scalar_prefetch=0,
            grid=(b_pad // tm,),
            in_specs=[
                # exp(logit_scale), precomputed in the wrapper.
                pl.BlockSpec(memory_space=pltpu.MemorySpace.SMEM),
                # pooled patches: streamed batch tiles.
                pl.BlockSpec((tm, patch_dim), lambda i: (i, 0)),
                # pre-normalized text features (embed, n_cls_pad): resident.
                pl.BlockSpec((embed, n_cls_pad), lambda i: (0, 0)),
                # fused image weight (patch_dim, embed): resident.
                pl.BlockSpec((patch_dim, embed), lambda i: (0, 0)),
            ],
            out_specs=pl.BlockSpec((tm, n_cls_pad), lambda i: (i, 0)),
        ),
        compiler_params=pltpu.CompilerParams(
            dimension_semantics=("parallel",)),
    )(scale_arr, pooled_patch, txt_t, w_fused)
    return out


# ----------------------------------------------------------------------------
# Parameters (deterministic synthetic stand-ins, shapes per module)
# ----------------------------------------------------------------------------
class CustomCLIPParams:
    def __init__(self, key, *, n_cls, n_ctx, suffix_len, ctx_dim, embed_dim,
                 img_channels, patch_size):
        ks = jax.random.split(key, 6)
        std = 0.02
        # PromptLearner (generic context, CSC=False, class_token_position='end')
        self.ctx = std * jax.random.normal(ks[0], (n_ctx, ctx_dim), jnp.float32)
        self.token_prefix = std * jax.random.normal(
            ks[1], (n_cls, 1, ctx_dim), jnp.float32)
        self.token_suffix = std * jax.random.normal(
            ks[2], (n_cls, suffix_len, ctx_dim), jnp.float32)
        # Image encoder stand-in (linear patch embed -> pool -> projection).
        # TODO(synk): real BiomedCLIP visual tower is a full ViT-B/16; the
        # weight fusion below is only exact while the stand-in stays linear.
        patch_dim = img_channels * patch_size * patch_size
        w_patch = std * jax.random.normal(
            ks[3], (patch_dim, ctx_dim), jnp.float32)
        w_img_proj = std * jax.random.normal(
            ks[4], (ctx_dim, embed_dim), jnp.float32)
        # Fuse the two linear image-path weights once, in f32, store bf16.
        self.w_fused = (w_patch @ w_img_proj).astype(jnp.bfloat16)
        # Text encoder stand-in (pool -> projection), kept in f32: the whole
        # text branch is precomputed outside the per-image kernel.
        # TODO(synk): real BiomedCLIP text tower is PubMedBERT.
        self.w_txt_proj = std * jax.random.normal(
            ks[5], (ctx_dim, embed_dim), jnp.float32)
        # CLIP logit scale (init as in open_clip: ln(1/0.07))
        self.logit_scale = jnp.asarray(math.log(1.0 / 0.07), jnp.float32)
        self.n_cls = n_cls
        self.n_ctx = n_ctx
        self.patch_size = patch_size


def prompt_learner_forward(params):
    # class_token_position == 'end': prompts = cat([prefix, ctx, suffix], dim=1)
    ctx = jnp.broadcast_to(params.ctx[None, :, :],
                           (params.n_cls,) + params.ctx.shape)
    return jnp.concatenate([params.token_prefix, ctx, params.token_suffix],
                           axis=1)


def precompute_text_features(params, n_cls_pad):
    """Whole text branch (param-only): prompts -> pool -> project -> normalize.

    Returns the pre-transposed, class-axis-padded (embed, n_cls_pad) bf16
    matrix consumed by the fused kernel.
    """
    prompts = prompt_learner_forward(params)                 # (n_cls, L, ctx)
    pooled = jnp.mean(prompts, axis=1)                       # (n_cls, ctx) f32
    txt = pooled @ params.w_txt_proj                          # (n_cls, embed)
    txt = txt * lax.rsqrt(jnp.sum(txt * txt, axis=-1, keepdims=True) + 1e-12)
    txt_t = txt.T.astype(jnp.bfloat16)                        # (embed, n_cls)
    pad = n_cls_pad - txt_t.shape[1]
    if pad:
        txt_t = jnp.pad(txt_t, ((0, 0), (0, pad)))
    return txt_t


# ----------------------------------------------------------------------------
# CustomCLIP forward (thin glue + single fused, batched Pallas kernel)
# ----------------------------------------------------------------------------
def custom_clip_forward(params, txt_t, scale_exp, image):
    B, C, H, W = image.shape
    P = params.patch_size
    nh, nw = H // P, W // P
    # Mean over patch positions commutes with the linear patch embedding:
    #   mean_p(patch_p) @ W == mean_p(patch_p @ W)
    # The reshape keeps the NCHW buffer contiguous (no 6-D transpose copy).
    pooled = image.reshape(B, C, nh, P, nw, P).mean(axis=(2, 4))
    pooled = pooled.reshape(B, C * P * P).astype(jnp.bfloat16)  # (B, patch_dim)
    logits = fused_clip_call(pooled, txt_t, params.w_fused, scale_exp)
    return logits[:B, :params.n_cls]


# ----------------------------------------------------------------------------
# Demo
# ----------------------------------------------------------------------------
if __name__ == "__main__":
    key = jax.random.PRNGKey(0)
    k_params, k_img = jax.random.split(key)

    n_cls = 4          # number of classnames
    n_ctx = 4          # number of learnable context tokens
    suffix_len = 3     # tokens after the context (class name + '.' + EOS)
    ctx_dim = 768      # hard-coded in PromptLearner
    embed_dim = 512    # joint CLIP embedding dim
    B, C, H, W = 2, 3, 32, 32
    patch = 16

    params = CustomCLIPParams(
        k_params, n_cls=n_cls, n_ctx=n_ctx, suffix_len=suffix_len,
        ctx_dim=ctx_dim, embed_dim=embed_dim, img_channels=C, patch_size=patch)

    image = jax.random.normal(k_img, (B, C, H, W), jnp.float32)  # NCHW

    # Param-only hoists (done once, outside the per-image hot path).
    n_cls_pad = _round_up(n_cls, 128)
    txt_t = precompute_text_features(params, n_cls_pad)
    scale_exp = jnp.exp(params.logit_scale)

    fwd = jax.jit(functools.partial(custom_clip_forward, params, txt_t,
                                    scale_exp))
    logits = fwd(image)
    jax.block_until_ready(logits)

    # Pure-JAX reference of the same (bf16-weight) math, as a sanity check.
    pooled_ref = image.reshape(B, C, H // patch, patch, W // patch, patch)
    pooled_ref = pooled_ref.mean(axis=(2, 4)).reshape(B, C * patch * patch)
    pooled_ref = pooled_ref.astype(jnp.bfloat16)
    img_ref = jnp.dot(pooled_ref, params.w_fused,
                      preferred_element_type=jnp.float32)
    img_ref = img_ref * lax.rsqrt(
        jnp.sum(img_ref * img_ref, axis=-1, keepdims=True) + 1e-12)
    ref = scale_exp * jnp.dot(img_ref.astype(jnp.bfloat16), txt_t[:, :n_cls],
                              preferred_element_type=jnp.float32)

    assert logits.shape == (B, n_cls)
    assert logits.dtype == jnp.float32
    assert bool(jnp.all(jnp.isfinite(logits)))
    assert bool(jnp.allclose(logits, ref, rtol=5e-2, atol=5e-2))
    print("KERNEL_OK")
</pallas_src>

<mosaic_0001>
module attributes {stable_mosaic.version = 11 : i64} {
  func.func @_fused_clip_kernel(%arg0: i32, %arg1: memref<1x1xf32, #tpu.memory_space<smem>>, %arg2: memref<8x768xbf16, #tpu.memory_space<vmem>>, %arg3: memref<512x128xbf16, #tpu.memory_space<vmem>>, %arg4: memref<768x512xbf16, #tpu.memory_space<vmem>>, %arg5: memref<8x128xf32, #tpu.memory_space<vmem>>) attributes {dimension_semantics = [#tpu.dimension_semantics<parallel>], iteration_bounds = array<i64: 1>, scalar_prefetch = 0 : i64, scratch_operands = 0 : i64, tpu.core_type = #tpu.core_type<tc>, window_params = [{transform_indices = @transform_0, window_bounds = array<i64: 1, 1>}, {transform_indices = @transform_1, window_bounds = array<i64: 8, 768>}, {pipeline_mode = #tpu.pipeline_mode<synchronous>, transform_indices = @transform_2, window_bounds = array<i64: 512, 128>}, {pipeline_mode = #tpu.pipeline_mode<synchronous>, transform_indices = @transform_3, window_bounds = array<i64: 768, 512>}, {transform_indices = @transform_4, window_bounds = array<i64: 8, 128>}]} {
    %c0 = arith.constant 0 : index
    %c0_0 = arith.constant 0 : index
    %0 = vector.load %arg2[%c0, %c0_0] : memref<8x768xbf16, #tpu.memory_space<vmem>>, vector<8x768xbf16>
    %c0_1 = arith.constant 0 : index
    %c0_2 = arith.constant 0 : index
    %1 = vector.load %arg4[%c0_1, %c0_2] : memref<768x512xbf16, #tpu.memory_space<vmem>>, vector<768x512xbf16>
    %cst = arith.constant dense<0.000000e+00> : vector<8x512xf32>
    %2 = tpu.matmul %0, %1, %cst {dimension_numbers = #tpu.dot_dimension_numbers<[1], [0], [0], [1], [0, 0, 1, 1], [], []>} : vector<8x768xbf16>, vector<768x512xbf16>, vector<8x512xf32> -> vector<8x512xf32>
    %3 = arith.mulf %2, %2 : vector<8x512xf32>
    %cst_3 = arith.constant dense<0.000000e+00> : vector<8xf32>
    %4 = vector.multi_reduction <add>, %3, %cst_3 [1] : vector<8x512xf32> to vector<8xf32>
    %5 = vector.shape_cast %4 : vector<8xf32> to vector<8x1xf32>
    %cst_4 = arith.constant 9.99999996E-13 : f32
    %6 = vector.broadcast %cst_4 : f32 to vector<8x1xf32>
    %7 = arith.addf %5, %6 : vector<8x1xf32>
    %8 = math.rsqrt %7 : vector<8x1xf32>
    %9 = vector.broadcast %8 : vector<8x1xf32> to vector<8x512xf32>
    %10 = arith.mulf %2, %9 : vector<8x512xf32>
    %11 = arith.truncf %10 : vector<8x512xf32> to vector<8x512xbf16>
    %c0_5 = arith.constant 0 : index
    %c0_6 = arith.constant 0 : index
    %12 = vector.load %arg3[%c0_5, %c0_6] : memref<512x128xbf16, #tpu.memory_space<vmem>>, vector<512x128xbf16>
    %cst_7 = arith.constant dense<0.000000e+00> : vector<8x128xf32>
    %13 = tpu.matmul %11, %12, %cst_7 {dimension_numbers = #tpu.dot_dimension_numbers<[1], [0], [0], [1], [0, 0, 1, 1], [], []>} : vector<8x512xbf16>, vector<512x128xbf16>, vector<8x128xf32> -> vector<8x128xf32>
    %c0_8 = arith.constant 0 : index
    %c0_9 = arith.constant 0 : index
    %14 = memref.load %arg1[%c0_8, %c0_9] : memref<1x1xf32, #tpu.memory_space<smem>>
    %15 = vector.broadcast %14 : f32 to vector<8x128xf32>
    %16 = arith.mulf %15, %13 : vector<8x128xf32>
    %c0_10 = arith.constant 0 : index
    %c0_11 = arith.constant 0 : index
    %17 = vector.load %arg5[%c0_10, %c0_11] : memref<8x128xf32, #tpu.memory_space<vmem>>, vector<8x128xf32>
    tpu.vector_store %arg5[%c0_10, %c0_11], %16 {strides = array<i32>} : memref<8x128xf32, #tpu.memory_space<vmem>>, vector<8x128xf32>,
    return
  }
  func.func @transform_0(%arg0: i32) -> (i32, i32) {
    %c0_i32 = arith.constant 0 : i32
    %c0_i32_0 = arith.constant 0 : i32
    %c0_i32_1 = arith.constant 0 : i32
    return %c0_i32, %c0_i32_0 : i32, i32
  }
  func.func @transform_1(%arg0: i32) -> (i32, i32) {
    %c0_i32 = arith.constant 0 : i32
    %c0_i32_0 = arith.constant 0 : i32
    return %arg0, %c0_i32 : i32, i32
  }
  func.func @transform_2(%arg0: i32) -> (i32, i32) {
    %c0_i32 = arith.constant 0 : i32
    %c0_i32_0 = arith.constant 0 : i32
    %c0_i32_1 = arith.constant 0 : i32
    return %c0_i32, %c0_i32_0 : i32, i32
  }
  func.func @transform_3(%arg0: i32) -> (i32, i32) {
    %c0_i32 = arith.constant 0 : i32
    %c0_i32_0 = arith.constant 0 : i32
    %c0_i32_1 = arith.constant 0 : i32
    return %c0_i32, %c0_i32_0 : i32, i32
  }
  func.func @transform_4(%arg0: i32) -> (i32, i32) {
    %c0_i32 = arith.constant 0 : i32
    %c0_i32_0 = arith.constant 0 : i32
    return %arg0, %c0_i32 : i32, i32
  }
}

</mosaic_0001>

<bundles_post_ra>
// kernel: custom_clip_forward.1
= control target key start
LH: loop header
LB: loop body
LE: loop exit
PB: predicated region body
PF: predicated region fallthrough
CT: control target
= control target key end

     0   :  { %s3146_s3 = inlined_call_operand.vmem [shape: bf16[768,512], index: 3, kind: input, shape index: {}]   ;;  %s3147_s1 = inlined_call_operand.vmem [shape: bf16[8,768], index: 1, kind: input, shape index: {}]   ;;  %s3148_s2 = inlined_call_operand.vmem [shape: bf16[512,128], index: 2, kind: input, shape index: {}]   ;;  %s3149_s0 = inlined_call_operand.<no memory space> [shape: f32[1,1], index: 0, kind: input, shape index: {}]   ;;  %s3150_s4 = inlined_call_operand.vmem [shape: f32[8,128], index: 4, kind: output, shape index: {}]  }
   0x1   :  { %v2094_v0 = vld [vmem:[%s3146_s3 + $0x4] ss:$16 sps:$4 sm:$0xff]   ;;  %v2096_v1 = vld [vmem:[%s3146_s3 + $0xc] ss:$16 sps:$4 sm:$0xff]   ;;  %v2098_v2 = vld [vmem:[%s3146_s3] ss:$16 sps:$4 sm:$0xff]  }
   0x2   :  { %1195 = vmatprep.subr.bf16.mxu0 %v2094_v0  ;;  %v2099_v3 = vld [vmem:[%s3146_s3 + $0x8] ss:$16 sps:$4 sm:$0xff]   ;;  %1318 = vmatprep.subr.bf16.mxu1 %v2096_v1  ;;  %v2100_v4 = vld [vmem:[%s3146_s3 + $0x24] ss:$16 sps:$4 sm:$0xff]   ;;  %v2102_v5 = vld [vmem:[%s3146_s3 + $0x2c] ss:$16 sps:$4 sm:$0xff]  }
   0x3   :  { %1196 = vmatpush1.bf16.msra.mxu0 %v2098_v2  ;;  %1319 = vmatpush1.bf16.msra.mxu1 %v2099_v3  ;;  %v2104_v6 = vld [vmem:[%s3146_s3 + $0x20] ss:$16 sps:$4 sm:$0xff]   ;;  %v2105_v7 = vld [vmem:[%s3146_s3 + $0x28] ss:$16 sps:$4 sm:$0xff]   ;;  %v2106_v8 = vld [vmem:[%s3146_s3 + $0x44] ss:$16 sps:$4 sm:$0xff]  }
   0x4   :  { %1197 = vmatprep.subr.bf16.mxu0 %v2100_v4  ;;  %1320 = vmatprep.subr.bf16.mxu1 %v2102_v5  ;;  %v2108_v9 = vld [vmem:[%s3146_s3 + $0x4c] ss:$16 sps:$4 sm:$0xff]   ;;  %v2110_v10 = vld [vmem:[%s3146_s3 + $0x40] ss:$16 sps:$4 sm:$0xff]   ;;  %v2111_v11 = vld [vmem:[%s3146_s3 + $0x48] ss:$16 sps:$4 sm:$0xff]  }
   0x5   :  { %v2112_v12 = vld [vmem:[%s3146_s3 + $0x64] ss:$16 sps:$4 sm:$0xff]   ;;  %v2114_v13 = vld [vmem:[%s3146_s3 + $0x6c] ss:$16 sps:$4 sm:$0xff]   ;;  %v2116_v14 = vld [vmem:[%s3146_s3 + $0x60] ss:$16 sps:$4 sm:$0xff]  }
   0x6   :  { %v2117_v15 = vld [vmem:[%s3146_s3 + $0x68] ss:$16 sps:$4 sm:$0xff]   ;;  %v2118_v16 = vld [vmem:[%s3146_s3 + $0x84] ss:$16 sps:$4 sm:$0xff]   ;;  %v2120_v17 = vld [vmem:[%s3146_s3 + $0x8c] ss:$16 sps:$4 sm:$0xff]  }
   0x7   :  { %1198 = vmatpush1.bf16.msra.mxu0 %v2104_v6  ;;  %1321 = vmatpush1.bf16.msra.mxu1 %v2105_v7  ;;  %v2122_v18 = vld [vmem:[%s3146_s3 + $0x80] ss:$16 sps:$4 sm:$0xff]   ;;  %v2123_v19 = vld [vmem:[%s3146_s3 + $0x88] ss:$16 sps:$4 sm:$0xff]   ;;  %v2124_v20 = vld [vmem:[%s3146_s3 + $0xa4] ss:$16 sps:$4 sm:$0xff]  }
   0x8   :  { %1199 = vmatprep.subr.bf16.mxu0 %v2106_v8  ;;  %1322 = vmatprep.subr.bf16.mxu1 %v2108_v9  ;;  %v2126_v21 = vld [vmem:[%s3146_s3 + $0xac] ss:$16 sps:$4 sm:$0xff]   ;;  %v2128_v22 = vld [vmem:[%s3146_s3 + $0xa0] ss:$16 sps:$4 sm:$0xff]   ;;  %v2129_v23 = vld [vmem:[%s3146_s3 + $0xa8] ss:$16 sps:$4 sm:$0xff]  }
   0x9   :  { %v2130_v24 = vld [vmem:[%s3146_s3 + $0xc4] ss:$16 sps:$4 sm:$0xff]   ;;  %v2132_v25 = vld [vmem:[%s3146_s3 + $0xcc] ss:$16 sps:$4 sm:$0xff]   ;;  %v2134_v26 = vld [vmem:[%s3146_s3 + $0xc0] ss:$16 sps:$4 sm:$0xff]  }
   0xa   :  { %v2135_v27 = vld [vmem:[%s3146_s3 + $0xc8] ss:$16 sps:$4 sm:$0xff]   ;;  %v2136_v28 = vld [vmem:[%s3146_s3 + $0xe4] ss:$16 sps:$4 sm:$0xff]   ;;  %v2138_v29 = vld [vmem:[%s3146_s3 + $0xec] ss:$16 sps:$4 sm:$0xff]  }
   0xb   :  { %1200 = vmatpush1.bf16.msra.mxu0 %v2110_v10  ;;  %1323 = vmatpush1.bf16.msra.mxu1 %v2111_v11  ;;  %v2140_v30 = vld [vmem:[%s3146_s3 + $0xe0] ss:$16 sps:$4 sm:$0xff]   ;;  %v2141_v31 = vld [vmem:[%s3146_s3 + $0xe8] ss:$16 sps:$4 sm:$0xff]   ;;  %v2142_v32 = vld [vmem:[%s3146_s3 + $0x104] ss:$16 sps:$4 sm:$0xff]  }
   0xc   :  { %1201 = vmatprep.subr.bf16.mxu0 %v2112_v12  ;;  %1324 = vmatprep.subr.bf16.mxu1 %v2114_v13  ;;  %v2144_v33 = vld [vmem:[%s3146_s3 + $0x10c] ss:$16 sps:$4 sm:$0xff]   ;;  %v2146_v34 = vld [vmem:[%s3146_s3 + $0x100] ss:$16 sps:$4 sm:$0xff]   ;;  %v2147_v35 = vld [vmem:[%s3146_s3 + $0x108] ss:$16 sps:$4 sm:$0xff]  }
   0xd   :  { %v2148_v36 = vld [vmem:[%s3146_s3 + $0x124] ss:$16 sps:$4 sm:$0xff]   ;;  %v2150_v37 = vld [vmem:[%s3146_s3 + $0x12c] ss:$16 sps:$4 sm:$0xff]   ;;  %v2152_v38 = vld [vmem:[%s3146_s3 + $0x120] ss:$16 sps:$4 sm:$0xff]  }
   0xe   :  { %v2153_v39 = vld [vmem:[%s3146_s3 + $0x128] ss:$16 sps:$4 sm:$0xff]   ;;  %v2154_v40 = vld [vmem:[%s3146_s3 + $0x144] ss:$16 sps:$4 sm:$0xff]   ;;  %v2156_v41 = vld [vmem:[%s3146_s3 + $0x14c] ss:$16 sps:$4 sm:$0xff]  }
   0xf   :  { %1202 = vmatpush1.bf16.msra.mxu0 %v2116_v14  ;;  %1325 = vmatpush1.bf16.msra.mxu1 %v2117_v15  ;;  %v2158_v42 = vld [vmem:[%s3146_s3 + $0x140] ss:$16 sps:$4 sm:$0xff]   ;;  %v2159_v43 = vld [vmem:[%s3146_s3 + $0x148] ss:$16 sps:$4 sm:$0xff]   ;;  %v2160_v44 = vld [vmem:[%s3146_s3 + $0x164] ss:$16 sps:$4 sm:$0xff]  }
  0x10   :  { %1203 = vmatprep.subr.bf16.mxu0 %v2118_v16  ;;  %1326 = vmatprep.subr.bf16.mxu1 %v2120_v17  ;;  %v2162_v45 = vld [vmem:[%s3146_s3 + $0x16c] ss:$16 sps:$4 sm:$0xff]   ;;  %v19_v46 = vld [vmem:[%s3147_s1] sm:$0xff]  ;;  %v2165_v49 = vld [vmem:[%s3146_s3 + $0x168] ss:$16 sps:$4 sm:$0xff]  }
  0x11   :  { %v2164_v47 = vld [vmem:[%s3146_s3 + $0x160] ss:$16 sps:$4 sm:$0xff]   ;;  %v1805_v48 = vcombine.high %v19_v46, %v19_v46  ;;  %v2166_v50 = vld [vmem:[%s3146_s3 + $0x184] ss:$16 sps:$4 sm:$0xff]   ;;  %v2168_v51 = vld [vmem:[%s3146_s3 + $0x18c] ss:$16 sps:$4 sm:$0xff]   ;;  %v1804_v4 = vcombine.low %v19_v46, %v19_v46 }
  0x12   :  { %v2170_v52 = vld [vmem:[%s3146_s3 + $0x180] ss:$16 sps:$4 sm:$0xff]   ;;  %v2171_v53 = vld [vmem:[%s3146_s3 + $0x188] ss:$16 sps:$4 sm:$0xff]   ;;  %v2172_v54 = vld [vmem:[%s3146_s3 + $0x1a4] ss:$16 sps:$4 sm:$0xff]  }
  0x13   :  { %1204 = vmatpush1.bf16.msra.mxu0 %v2122_v18  ;;  %1327 = vmatpush1.bf16.msra.mxu1 %v2123_v19  ;;  %v2174_v55 = vld [vmem:[%s3146_s3 + $0x1ac] ss:$16 sps:$4 sm:$0xff]   ;;  %v2176_v56 = vld [vmem:[%s3146_s3 + $0x1a0] ss:$16 sps:$4 sm:$0xff]   ;;  %v2177_v57 = vld [vmem:[%s3146_s3 + $0x1a8] ss:$16 sps:$4 sm:$0xff]  }
  0x14   :  { %1205 = vmatprep.subr.bf16.mxu0 %v2124_v20  ;;  %1328 = vmatprep.subr.bf16.mxu1 %v2126_v21  ;;  %v2178_v58 = vld [vmem:[%s3146_s3 + $0x1c4] ss:$16 sps:$4 sm:$0xff]   ;;  %v2180_v59 = vld [vmem:[%s3146_s3 + $0x1cc] ss:$16 sps:$4 sm:$0xff]   ;;  %v2182_v60 = vld [vmem:[%s3146_s3 + $0x1c0] ss:$16 sps:$4 sm:$0xff]  }
  0x15   :  { %1227 = vmatprep.mubr.bf16.mxu0 %v1805_v48  ;;  %1350 = vmatprep.mubr.bf16.mxu1 %v1805_v48  ;;  %v2183_v61 = vld [vmem:[%s3146_s3 + $0x1c8] ss:$16 sps:$4 sm:$0xff]   ;;  %v2184_v62 = vld [vmem:[%s3146_s3 + $0x1e4] ss:$16 sps:$4 sm:$0xff]   ;;  %v2186_v63 = vld [vmem:[%s3146_s3 + $0x1ec] ss:$16 sps:$4 sm:$0xff]  }
  0x16   :  { %v2188_v0 = vld [vmem:[%s3146_s3 + $0x1e0] ss:$16 sps:$4 sm:$0xff]   ;;  %v2189_v1 = vld [vmem:[%s3146_s3 + $0x1e8] ss:$16 sps:$4 sm:$0xff]   ;;  %v2194_v2 = vld [vmem:[%s3146_s3 + $0x204] ss:$16 sps:$4 sm:$0xff]  }
  0x17   :  { %1206 = vmatpush1.bf16.msra.mxu0 %v2128_v22  ;;  %1329 = vmatpush1.bf16.msra.mxu1 %v2129_v23  ;;  %v2197_v3 = vld [vmem:[%s3146_s3 + $0x20c] ss:$16 sps:$4 sm:$0xff]   ;;  %v2192_v5 = vld [vmem:[%s3146_s3 + $0x200] ss:$16 sps:$4 sm:$0xff]   ;;  %v2195_v6 = vld [vmem:[%s3146_s3 + $0x208] ss:$16 sps:$4 sm:$0xff]  }
  0x18   :  { %1207 = vmatprep.subr.bf16.mxu0 %v2130_v24  ;;  %1330 = vmatprep.subr.bf16.mxu1 %v2132_v25  ;;  %v2200_v7 = vld [vmem:[%s3146_s3 + $0x224] ss:$16 sps:$4 sm:$0xff]   ;;  %v2203_v8 = vld [vmem:[%s3146_s3 + $0x22c] ss:$16 sps:$4 sm:$0xff]   ;;  %v2198_v9 = vld [vmem:[%s3146_s3 + $0x220] ss:$16 sps:$4 sm:$0xff]  }
  0x19   :  { %v2201_v10 = vld [vmem:[%s3146_s3 + $0x228] ss:$16 sps:$4 sm:$0xff]   ;;  %v2206_v11 = vld [vmem:[%s3146_s3 + $0x244] ss:$16 sps:$4 sm:$0xff]   ;;  %v2209_v12 = vld [vmem:[%s3146_s3 + $0x24c] ss:$16 sps:$4 sm:$0xff]  }
  0x1a   :  { %v2204_v13 = vld [vmem:[%s3146_s3 + $0x240] ss:$16 sps:$4 sm:$0xff]   ;;  %v2207_v14 = vld [vmem:[%s3146_s3 + $0x248] ss:$16 sps:$4 sm:$0xff]   ;;  %v2212_v15 = vld [vmem:[%s3146_s3 + $0x264] ss:$16 sps:$4 sm:$0xff]  }
  0x1b   :  { %1208 = vmatpush1.bf16.msra.mxu0 %v2134_v26  ;;  %1331 = vmatpush1.bf16.msra.mxu1 %v2135_v27  ;;  %v2215_v16 = vld [vmem:[%s3146_s3 + $0x26c] ss:$16 sps:$4 sm:$0xff]   ;;  %v2210_v17 = vld [vmem:[%s3146_s3 + $0x260] ss:$16 sps:$4 sm:$0xff]   ;;  %v2213_v18 = vld [vmem:[%s3146_s3 + $0x268] ss:$16 sps:$4 sm:$0xff]  }
  0x1c   :  { %1209 = vmatprep.subr.bf16.mxu0 %v2136_v28  ;;  %1332 = vmatprep.subr.bf16.mxu1 %v2138_v29  ;;  %v2218_v19 = vld [vmem:[%s3146_s3 + $0x284] ss:$16 sps:$4 sm:$0xff]   ;;  %v2221_v20 = vld [vmem:[%s3146_s3 + $0x28c] ss:$16 sps:$4 sm:$0xff]   ;;  %v2216_v21 = vld [vmem:[%s3146_s3 + $0x280] ss:$16 sps:$4 sm:$0xff]  }
  0x1d   :  { %v2219_v22 = vld [vmem:[%s3146_s3 + $0x288] ss:$16 sps:$4 sm:$0xff]   ;;  %v2224_v23 = vld [vmem:[%s3146_s3 + $0x2a4] ss:$16 sps:$4 sm:$0xff]   ;;  %v2227_v24 = vld [vmem:[%s3146_s3 + $0x2ac] ss:$16 sps:$4 sm:$0xff]  }
  0x1e   :  { %v2222_v25 = vld [vmem:[%s3146_s3 + $0x2a0] ss:$16 sps:$4 sm:$0xff]   ;;  %v2225_v26 = vld [vmem:[%s3146_s3 + $0x2a8] ss:$16 sps:$4 sm:$0xff]   ;;  %v2230_v27 = vld [vmem:[%s3146_s3 + $0x2c4] ss:$16 sps:$4 sm:$0xff]  }
  0x1f   :  { %1210 = vmatpush1.bf16.msra.mxu0 %v2140_v30  ;;  %1333 = vmatpush1.bf16.msra.mxu1 %v2141_v31  ;;  %v2233_v28 = vld [vmem:[%s3146_s3 + $0x2cc] ss:$16 sps:$4 sm:$0xff]   ;;  %v2228_v31 = vld [vmem:[%s3146_s3 + $0x2c0] ss:$16 sps:$4 sm:$0xff]   ;;  %v2255_v48 = vld [vmem:[%s3146_s3 + $0x348] ss:$16 sps:$4 sm:$0xff]  }
  0x20   :  { %1211 = vmatprep.subr.bf16.mxu0 %v2142_v32  ;;  %1334 = vmatprep.subr.bf16.mxu1 %v2144_v33  ;;  %v2723_v29 = vld [vmem:[%s3147_s1 + $0x8] sm:$0xff]  ;;  %v2236_v33 = vld [vmem:[%s3146_s3 + $0x2e4] ss:$16 sps:$4 sm:$0xff]  }
  0x21   :  { %v1807_v30 = vcombine.high %v2723_v29, %v2723_v29  ;;  %v2231_v32 = vld [vmem:[%s3146_s3 + $0x2c8] ss:$16 sps:$4 sm:$0xff]   ;;  %v2257_v46 = vld [vmem:[%s3146_s3 + $0x34c] ss:$16 sps:$4 sm:$0xff]  }
  0x23   :  { %1212 = vmatpush1.bf16.msra.mxu0 %v2146_v34  ;;  %1335 = vmatpush1.bf16.msra.mxu1 %v2147_v35  ;;  %v2239_v34 = vld [vmem:[%s3146_s3 + $0x2ec] ss:$16 sps:$4 sm:$0xff]   ;;  %v2234_v35 = vld [vmem:[%s3146_s3 + $0x2e0] ss:$16 sps:$4 sm:$0xff]  }
  0x24   :  { %1213 = vmatprep.subr.bf16.mxu0 %v2148_v36  ;;  %1336 = vmatprep.subr.bf16.mxu1 %v2150_v37  ;;  %v2237_v36 = vld [vmem:[%s3146_s3 + $0x2e8] ss:$16 sps:$4 sm:$0xff]   ;;  %v2242_v37 = vld [vmem:[%s3146_s3 + $0x304] ss:$16 sps:$4 sm:$0xff]  }
  0x27   :  { %1214 = vmatpush1.bf16.msra.mxu0 %v2152_v38  ;;  %1337 = vmatpush1.bf16.msra.mxu1 %v2153_v39  ;;  %v2245_v38 = vld [vmem:[%s3146_s3 + $0x30c] ss:$16 sps:$4 sm:$0xff]   ;;  %v2240_v39 = vld [vmem:[%s3146_s3 + $0x300] ss:$16 sps:$4 sm:$0xff]  }
  0x28   :  { %1215 = vmatprep.subr.bf16.mxu0 %v2154_v40  ;;  %1338 = vmatprep.subr.bf16.mxu1 %v2156_v41  ;;  %v2243_v40 = vld [vmem:[%s3146_s3 + $0x308] ss:$16 sps:$4 sm:$0xff]   ;;  %v2248_v41 = vld [vmem:[%s3146_s3 + $0x324] ss:$16 sps:$4 sm:$0xff]  }
  0x2b   :  { %1216 = vmatpush1.bf16.msra.mxu0 %v2158_v42  ;;  %1339 = vmatpush1.bf16.msra.mxu1 %v2159_v43  ;;  %v2251_v42 = vld [vmem:[%s3146_s3 + $0x32c] ss:$16 sps:$4 sm:$0xff]   ;;  %v2246_v43 = vld [vmem:[%s3146_s3 + $0x320] ss:$16 sps:$4 sm:$0xff]  }
  0x2c   :  { %1217 = vmatprep.subr.bf16.mxu0 %v2160_v44  ;;  %1340 = vmatprep.subr.bf16.mxu1 %v2162_v45  ;;  %v2249_v44 = vld [vmem:[%s3146_s3 + $0x328] ss:$16 sps:$4 sm:$0xff]   ;;  %v2254_v45 = vld [vmem:[%s3146_s3 + $0x344] ss:$16 sps:$4 sm:$0xff]  }
  0x2f   :  { %1218 = vmatpush1.bf16.msra.mxu0 %v2164_v47  ;;  %1341 = vmatpush1.bf16.msra.mxu1 %v2165_v49  ;;  %v2252_v47 = vld [vmem:[%s3146_s3 + $0x340] ss:$16 sps:$4 sm:$0xff]   ;;  %v2260_v49 = vld [vmem:[%s3146_s3 + $0x364] ss:$16 sps:$4 sm:$0xff]  }
  0x30   :  { %1219 = vmatprep.subr.bf16.mxu0 %v2166_v50  ;;  %1342 = vmatprep.subr.bf16.mxu1 %v2168_v51  ;;  %v2263_v50 = vld [vmem:[%s3146_s3 + $0x36c] ss:$16 sps:$4 sm:$0xff]   ;;  %v2258_v51 = vld [vmem:[%s3146_s3 + $0x360] ss:$16 sps:$4 sm:$0xff]  }
  0x33   :  { %1220 = vmatpush1.bf16.msra.mxu0 %v2170_v52  ;;  %1343 = vmatpush1.bf16.msra.mxu1 %v2171_v53  ;;  %v2261_v52 = vld [vmem:[%s3146_s3 + $0x368] ss:$16 sps:$4 sm:$0xff]   ;;  %v2266_v53 = vld [vmem:[%s3146_s3 + $0x384] ss:$16 sps:$4 sm:$0xff]  }
  0x34   :  { %1221 = vmatprep.subr.bf16.mxu0 %v2172_v54  ;;  %1344 = vmatprep.subr.bf16.mxu1 %v2174_v55  ;;  %v2269_v54 = vld [vmem:[%s3146_s3 + $0x38c] ss:$16 sps:$4 sm:$0xff]   ;;  %v2264_v55 = vld [vmem:[%s3146_s3 + $0x380] ss:$16 sps:$4 sm:$0xff]  }
  0x37   :  { %1222 = vmatpush1.bf16.msra.mxu0 %v2176_v56  ;;  %1345 = vmatpush1.bf16.msra.mxu1 %v2177_v57  ;;  %v2267_v56 = vld [vmem:[%s3146_s3 + $0x388] ss:$16 sps:$4 sm:$0xff]   ;;  %v2272_v57 = vld [vmem:[%s3146_s3 + $0x3a4] ss:$16 sps:$4 sm:$0xff]  }
  0x38   :  { %1223 = vmatprep.subr.bf16.mxu0 %v2178_v58  ;;  %1346 = vmatprep.subr.bf16.mxu1 %v2180_v59  ;;  %v2275_v58 = vld [vmem:[%s3146_s3 + $0x3ac] ss:$16 sps:$4 sm:$0xff]   ;;  %v2270_v59 = vld [vmem:[%s3146_s3 + $0x3a0] ss:$16 sps:$4 sm:$0xff]  }
  0x3b   :  { %1224 = vmatpush1.bf16.msra.mxu0 %v2182_v60  ;;  %1347 = vmatpush1.bf16.msra.mxu1 %v2183_v61  ;;  %v2273_v60 = vld [vmem:[%s3146_s3 + $0x3a8] ss:$16 sps:$4 sm:$0xff]   ;;  %v2278_v61 = vld [vmem:[%s3146_s3 + $0x3c4] ss:$16 sps:$4 sm:$0xff]  }
  0x3c   :  { %1225 = vmatprep.subr.bf16.mxu0 %v2184_v62  ;;  %1348 = vmatprep.subr.bf16.mxu1 %v2186_v63  ;;  %v2281_v62 = vld [vmem:[%s3146_s3 + $0x3cc] ss:$16 sps:$4 sm:$0xff]   ;;  %v2276_v63 = vld [vmem:[%s3146_s3 + $0x3c0] ss:$16 sps:$4 sm:$0xff]  }
  0x3f   :  { %1226 = vmatpush1.bf16.msra.mxu0 %v2188_v0  ;;  %1349 = vmatpush1.bf16.msra.mxu1 %v2189_v1  ;;  %v2279_v0 = vld [vmem:[%s3146_s3 + $0x3c8] ss:$16 sps:$4 sm:$0xff]   ;;  %v2284_v1 = vld [vmem:[%s3146_s3 + $0x3e4] ss:$16 sps:$4 sm:$0xff]  }
  0x40   :  { %1236 = vmatprep.subr.bf16.mxu0 %v2194_v2  ;;  %1359 = vmatprep.subr.bf16.mxu1 %v2197_v3  ;;  %v2287_v2 = vld [vmem:[%s3146_s3 + $0x3ec] ss:$16 sps:$4 sm:$0xff]   ;;  %v2282_v3 = vld [vmem:[%s3146_s3 + $0x3e0] ss:$16 sps:$4 sm:$0xff]  }
  0x42   :  { %1228 = vmatmul.mubr.bf16.vlgmr.msra.gmra.mrb[0].mxu0 %v1804_v4  ;;  %1351 = vmatmul.mubr.bf16.vlgmr.msra.gmra.mrb[0].mxu1 %v1804_v4  ;;  %v2285_v4 = vld [vmem:[%s3146_s3 + $0x3e8] ss:$16 sps:$4 sm:$0xff]  }
  0x43   :  { %1237 = vmatpush1.bf16.msra.mxu0 %v2192_v5  ;;  %1360 = vmatpush1.bf16.msra.mxu1 %v2195_v6  ;;  %v2292_v5 = vld [vmem:[%s3146_s3 + $0x404] ss:$16 sps:$4 sm:$0xff]   ;;  %v2295_v6 = vld [vmem:[%s3146_s3 + $0x40c] ss:$16 sps:$4 sm:$0xff]  }
  0x44   :  { %1238 = vmatprep.subr.bf16.mxu0 %v2200_v7  ;;  %1361 = vmatprep.subr.bf16.mxu1 %v2203_v8  ;;  %v1806_v7 = vcombine.low %v2723_v29, %v2723_v29  ;;  %v2290_v8 = vld [vmem:[%s3146_s3 + $0x400] ss:$16 sps:$4 sm:$0xff]   ;;  %v2325_v29 = vld [vmem:[%s3146_s3 + $0x4ac] ss:$16 sps:$4 sm:$0xff]  }
  0x45   :  { %1268 = vmatprep.mubr.bf16.mxu0 %v1807_v30  ;;  %1391 = vmatprep.mubr.bf16.mxu1 %v1807_v30  ;;  %v2320_v30 = vld [vmem:[%s3146_s3 + $0x4a0] ss:$16 sps:$4 sm:$0xff]  }
  0x47   :  { %1239 = vmatpush1.bf16.msra.mxu0 %v2198_v9  ;;  %1362 = vmatpush1.bf16.msra.mxu1 %v2201_v10  ;;  %v2293_v9 = vld [vmem:[%s3146_s3 + $0x408] ss:$16 sps:$4 sm:$0xff]   ;;  %v2858_v10 = vld [vmem:[%s3147_s1 + $0x10] sm:$0xff] }
  0x48   :  { %1240 = vmatprep.subr.bf16.mxu0 %v2206_v11  ;;  %1363 = vmatprep.subr.bf16.mxu1 %v2209_v12  ;;  %v2298_v11 = vld [vmem:[%s3146_s3 + $0x424] ss:$16 sps:$4 sm:$0xff]   ;;  %v2301_v12 = vld [vmem:[%s3146_s3 + $0x42c] ss:$16 sps:$4 sm:$0xff]  }
  0x4b   :  { %1241 = vmatpush1.bf16.msra.mxu0 %v2204_v13  ;;  %1364 = vmatpush1.bf16.msra.mxu1 %v2207_v14  ;;  %v1809_v13 = vcombine.high %v2858_v10, %v2858_v10  ;;  %v2296_v14 = vld [vmem:[%s3146_s3 + $0x420] ss:$16 sps:$4 sm:$0xff]  }
  0x4c   :  { %1242 = vmatprep.subr.bf16.mxu0 %v2212_v15  ;;  %1365 = vmatprep.subr.bf16.mxu1 %v2215_v16  ;;  %v2299_v15 = vld [vmem:[%s3146_s3 + $0x428] ss:$16 sps:$4 sm:$0xff]   ;;  %v2304_v16 = vld [vmem:[%s3146_s3 + $0x444] ss:$16 sps:$4 sm:$0xff]  }
  0x4f   :  { %1243 = vmatpush1.bf16.msra.mxu0 %v2210_v17  ;;  %1366 = vmatpush1.bf16.msra.mxu1 %v2213_v18  ;;  %v2307_v17 = vld [vmem:[%s3146_s3 + $0x44c] ss:$16 sps:$4 sm:$0xff]   ;;  %v2302_v18 = vld [vmem:[%s3146_s3 + $0x440] ss:$16 sps:$4 sm:$0xff]  }
  0x50   :  { %1244 = vmatprep.subr.bf16.mxu0 %v2218_v19  ;;  %1367 = vmatprep.subr.bf16.mxu1 %v2221_v20  ;;  %v2305_v19 = vld [vmem:[%s3146_s3 + $0x448] ss:$16 sps:$4 sm:$0xff]   ;;  %v2310_v20 = vld [vmem:[%s3146_s3 + $0x464] ss:$16 sps:$4 sm:$0xff]  }
  0x53   :  { %1245 = vmatpush1.bf16.msra.mxu0 %v2216_v21  ;;  %1368 = vmatpush1.bf16.msra.mxu1 %v2219_v22  ;;  %v2313_v21 = vld [vmem:[%s3146_s3 + $0x46c] ss:$16 sps:$4 sm:$0xff]   ;;  %v2308_v22 = vld [vmem:[%s3146_s3 + $0x460] ss:$16 sps:$4 sm:$0xff]  }
  0x54   :  { %1246 = vmatprep.subr.bf16.mxu0 %v2224_v23  ;;  %1369 = vmatprep.subr.bf16.mxu1 %v2227_v24  ;;  %v2311_v23 = vld [vmem:[%s3146_s3 + $0x468] ss:$16 sps:$4 sm:$0xff]   ;;  %v2316_v24 = vld [vmem:[%s3146_s3 + $0x484] ss:$16 sps:$4 sm:$0xff]  }
  0x57   :  { %1247 = vmatpush1.bf16.msra.mxu0 %v2222_v25  ;;  %1370 = vmatpush1.bf16.msra.mxu1 %v2225_v26  ;;  %v2319_v25 = vld [vmem:[%s3146_s3 + $0x48c] ss:$16 sps:$4 sm:$0xff]   ;;  %v2314_v26 = vld [vmem:[%s3146_s3 + $0x480] ss:$16 sps:$4 sm:$0xff]  }
  0x58   :  { %1248 = vmatprep.subr.bf16.mxu0 %v2230_v27  ;;  %1371 = vmatprep.subr.bf16.mxu1 %v2233_v28  ;;  %v2317_v27 = vld [vmem:[%s3146_s3 + $0x488] ss:$16 sps:$4 sm:$0xff]   ;;  %v2322_v28 = vld [vmem:[%s3146_s3 + $0x4a4] ss:$16 sps:$4 sm:$0xff]  }
  0x5b   :  { %1249 = vmatpush1.bf16.msra.mxu0 %v2228_v31  ;;  %1372 = vmatpush1.bf16.msra.mxu1 %v2231_v32  ;;  %v2323_v31 = vld [vmem:[%s3146_s3 + $0x4a8] ss:$16 sps:$4 sm:$0xff]   ;;  %v2328_v32 = vld [vmem:[%s3146_s3 + $0x4c4] ss:$16 sps:$4 sm:$0xff]  }
  0x5c   :  { %1250 = vmatprep.subr.bf16.mxu0 %v2236_v33  ;;  %1373 = vmatprep.subr.bf16.mxu1 %v2239_v34  ;;  %v2331_v33 = vld [vmem:[%s3146_s3 + $0x4cc] ss:$16 sps:$4 sm:$0xff]   ;;  %v2326_v34 = vld [vmem:[%s3146_s3 + $0x4c0] ss:$16 sps:$4 sm:$0xff]  }
  0x5f   :  { %1251 = vmatpush1.bf16.msra.mxu0 %v2234_v35  ;;  %1374 = vmatpush1.bf16.msra.mxu1 %v2237_v36  ;;  %v2329_v35 = vld [vmem:[%s3146_s3 + $0x4c8] ss:$16 sps:$4 sm:$0xff]   ;;  %v2334_v36 = vld [vmem:[%s3146_s3 + $0x4e4] ss:$16 sps:$4 sm:$0xff]  }
  0x60   :  { %1252 = vmatprep.subr.bf16.mxu0 %v2242_v37  ;;  %1375 = vmatprep.subr.bf16.mxu1 %v2245_v38  ;;  %v2337_v37 = vld [vmem:[%s3146_s3 + $0x4ec] ss:$16 sps:$4 sm:$0xff]   ;;  %v2332_v38 = vld [vmem:[%s3146_s3 + $0x4e0] ss:$16 sps:$4 sm:$0xff]  }
  0x63   :  { %1253 = vmatpush1.bf16.msra.mxu0 %v2240_v39  ;;  %1376 = vmatpush1.bf16.msra.mxu1 %v2243_v40  ;;  %v2335_v39 = vld [vmem:[%s3146_s3 + $0x4e8] ss:$16 sps:$4 sm:$0xff]   ;;  %v2340_v40 = vld [vmem:[%s3146_s3 + $0x504] ss:$16 sps:$4 sm:$0xff]  }
  0x64   :  { %1254 = vmatprep.subr.bf16.mxu0 %v2248_v41  ;;  %1377 = vmatprep.subr.bf16.mxu1 %v2251_v42  ;;  %v2343_v41 = vld [vmem:[%s3146_s3 + $0x50c] ss:$16 sps:$4 sm:$0xff]   ;;  %v2338_v42 = vld [vmem:[%s3146_s3 + $0x500] ss:$16 sps:$4 sm:$0xff]  }
  0x67   :  { %1255 = vmatpush1.bf16.msra.mxu0 %v2246_v43  ;;  %1378 = vmatpush1.bf16.msra.mxu1 %v2249_v44  ;;  %v2341_v43 = vld [vmem:[%s3146_s3 + $0x508] ss:$16 sps:$4 sm:$0xff]   ;;  %v2346_v44 = vld [vmem:[%s3146_s3 + $0x524] ss:$16 sps:$4 sm:$0xff]  }
  0x68   :  { %1256 = vmatprep.subr.bf16.mxu0 %v2254_v45  ;;  %1379 = vmatprep.subr.bf16.mxu1 %v2257_v46  ;;  %v2349_v45 = vld [vmem:[%s3146_s3 + $0x52c] ss:$16 sps:$4 sm:$0xff]   ;;  %v2344_v46 = vld [vmem:[%s3146_s3 + $0x520] ss:$16 sps:$4 sm:$0xff]  }
  0x6b   :  { %1257 = vmatpush1.bf16.msra.mxu0 %v2252_v47  ;;  %1380 = vmatpush1.bf16.msra.mxu1 %v2255_v48  ;;  %v2347_v47 = vld [vmem:[%s3146_s3 + $0x528] ss:$16 sps:$4 sm:$0xff]   ;;  %v2352_v48 = vld [vmem:[%s3146_s3 + $0x544] ss:$16 sps:$4 sm:$0xff]  }
  0x6c   :  { %1258 = vmatprep.subr.bf16.mxu0 %v2260_v49  ;;  %1381 = vmatprep.subr.bf16.mxu1 %v2263_v50  ;;  %v2355_v49 = vld [vmem:[%s3146_s3 + $0x54c] ss:$16 sps:$4 sm:$0xff]   ;;  %v2350_v50 = vld [vmem:[%s3146_s3 + $0x540] ss:$16 sps:$4 sm:$0xff]  }
  0x6f   :  { %1259 = vmatpush1.bf16.msra.mxu0 %v2258_v51  ;;  %1382 = vmatpush1.bf16.msra.mxu1 %v2261_v52  ;;  %v2353_v51 = vld [vmem:[%s3146_s3 + $0x548] ss:$16 sps:$4 sm:$0xff]   ;;  %v2358_v52 = vld [vmem:[%s3146_s3 + $0x564] ss:$16 sps:$4 sm:$0xff]  }
  0x70   :  { %1260 = vmatprep.subr.bf16.mxu0 %v2266_v53  ;;  %1383 = vmatprep.subr.bf16.mxu1 %v2269_v54  ;;  %v2361_v53 = vld [vmem:[%s3146_s3 + $0x56c] ss:$16 sps:$4 sm:$0xff]   ;;  %v2356_v54 = vld [vmem:[%s3146_s3 + $0x560] ss:$16 sps:$4 sm:$0xff]  }
  0x73   :  { %1261 = vmatpush1.bf16.msra.mxu0 %v2264_v55  ;;  %1384 = vmatpush1.bf16.msra.mxu1 %v2267_v56  ;;  %v2359_v55 = vld [vmem:[%s3146_s3 + $0x568] ss:$16 sps:$4 sm:$0xff]   ;;  %v2364_v56 = vld [vmem:[%s3146_s3 + $0x584] ss:$16 sps:$4 sm:$0xff]  }
  0x74   :  { %1262 = vmatprep.subr.bf16.mxu0 %v2272_v57  ;;  %1385 = vmatprep.subr.bf16.mxu1 %v2275_v58  ;;  %v2367_v57 = vld [vmem:[%s3146_s3 + $0x58c] ss:$16 sps:$4 sm:$0xff]   ;;  %v2362_v58 = vld [vmem:[%s3146_s3 + $0x580] ss:$16 sps:$4 sm:$0xff]  }
  0x77   :  { %1263 = vmatpush1.bf16.msra.mxu0 %v2270_v59  ;;  %1386 = vmatpush1.bf16.msra.mxu1 %v2273_v60  ;;  %v2365_v59 = vld [vmem:[%s3146_s3 + $0x588] ss:$16 sps:$4 sm:$0xff]   ;;  %v2370_v60 = vld [vmem:[%s3146_s3 + $0x5a4] ss:$16 sps:$4 sm:$0xff]  }
  0x78   :  { %1264 = vmatprep.subr.bf16.mxu0 %v2278_v61  ;;  %1387 = vmatprep.subr.bf16.mxu1 %v2281_v62  ;;  %v2373_v61 = vld [vmem:[%s3146_s3 + $0x5ac] ss:$16 sps:$4 sm:$0xff]   ;;  %v2368_v62 = vld [vmem:[%s3146_s3 + $0x5a0] ss:$16 sps:$4 sm:$0xff]  }
  0x7b   :  { %1265 = vmatpush1.bf16.msra.mxu0 %v2276_v63  ;;  %1388 = vmatpush1.bf16.msra.mxu1 %v2279_v0  ;;  %v2371_v63 = vld [vmem:[%s3146_s3 + $0x5a8] ss:$16 sps:$4 sm:$0xff]   ;;  %v2376_v0 = vld [vmem:[%s3146_s3 + $0x5c4] ss:$16 sps:$4 sm:$0xff]  }
  0x7c   :  { %1266 = vmatprep.subr.bf16.mxu0 %v2284_v1  ;;  %1389 = vmatprep.subr.bf16.mxu1 %v2287_v2  ;;  %v2379_v1 = vld [vmem:[%s3146_s3 + $0x5cc] ss:$16 sps:$4 sm:$0xff]   ;;  %v2374_v2 = vld [vmem:[%s3146_s3 + $0x5c0] ss:$16 sps:$4 sm:$0xff]  }
  0x7f   :  { %1267 = vmatpush1.bf16.msra.mxu0 %v2282_v3  ;;  %1390 = vmatpush1.bf16.msra.mxu1 %v2285_v4  ;;  %v2377_v3 = vld [vmem:[%s3146_s3 + $0x5c8] ss:$16 sps:$4 sm:$0xff]   ;;  %v2382_v4 = vld [vmem:[%s3146_s3 + $0x5e4] ss:$16 sps:$4 sm:$0xff]  }
  0x80   :  { %1277 = vmatprep.subr.bf16.mxu0 %v2292_v5  ;;  %1400 = vmatprep.subr.bf16.mxu1 %v2295_v6  ;;  %v2385_v5 = vld [vmem:[%s3146_s3 + $0x5ec] ss:$16 sps:$4 sm:$0xff]   ;;  %v2380_v6 = vld [vmem:[%s3146_s3 + $0x5e0] ss:$16 sps:$4 sm:$0xff]  }
  0x82   :  { %1269 = vmatmul.mubr.bf16.vlgmr.msra.gmra.mrb[0].mxu0 %v1806_v7  ;;  %1392 = vmatmul.mubr.bf16.vlgmr.msra.gmra.mrb[0].mxu1 %v1806_v7  ;;  %v2383_v7 = vld [vmem:[%s3146_s3 + $0x5e8] ss:$16 sps:$4 sm:$0xff]  }
  0x83   :  { %1278 = vmatpush1.bf16.msra.mxu0 %v2290_v8  ;;  %1401 = vmatpush1.bf16.msra.mxu1 %v2293_v9  ;;  %v1808_v8 = vcombine.low %v2858_v10, %v2858_v10  ;;  %v2388_v9 = vld [vmem:[%s3148_s2 + $0x40] sm:$0xff]  }
  0x84   :  { %1279 = vmatprep.subr.bf16.mxu0 %v2298_v11  ;;  %1402 = vmatprep.subr.bf16.mxu1 %v2301_v12  ;;  %v2389_v11 = vld [vmem:[%s3148_s2 + $0xc0] sm:$0xff]  }
  0x85   :  { %1309 = vmatprep.mubr.bf16.mxu0 %v1809_v13  ;;  %1432 = vmatprep.mubr.bf16.mxu1 %v1809_v13  ;;  %v2390_v12 = vld [vmem:[%s3148_s2] sm:$0xff]   ;;  %v2392_v13 = vld [vmem:[%s3148_s2 + $0x48] sm:$0xff]  }
  0x86   :  { %v2391_v10 = vld [vmem:[%s3148_s2 + $0x80] sm:$0xff]  }
  0x87   :  { %1280 = vmatpush1.bf16.msra.mxu0 %v2296_v14  ;;  %1403 = vmatpush1.bf16.msra.mxu1 %v2299_v15  ;;  %v2393_v14 = vld [vmem:[%s3148_s2 + $0xc8] sm:$0xff]  }
  0x88   :  { %1281 = vmatprep.subr.bf16.mxu0 %v2304_v16  ;;  %1404 = vmatprep.subr.bf16.mxu1 %v2307_v17  ;;  %v2394_v15 = vld [vmem:[%s3148_s2 + $0x8] sm:$0xff]   ;;  %v2396_v17 = vld [vmem:[%s3148_s2 + $0x50] sm:$0xff]  }
  0x89   :  { %v2395_v16 = vld [vmem:[%s3148_s2 + $0x88] sm:$0xff]  }
  0x8b   :  { %1282 = vmatpush1.bf16.msra.mxu0 %v2302_v18  ;;  %1405 = vmatpush1.bf16.msra.mxu1 %v2305_v19  ;;  %v2397_v18 = vld [vmem:[%s3148_s2 + $0xd0] sm:$0xff]  }
  0x8c   :  { %1283 = vmatprep.subr.bf16.mxu0 %v2310_v20  ;;  %1406 = vmatprep.subr.bf16.mxu1 %v2313_v21  ;;  %v2398_v19 = vld [vmem:[%s3148_s2 + $0x10] sm:$0xff]   ;;  %v2400_v21 = vld [vmem:[%s3148_s2 + $0x58] sm:$0xff]  }
  0x8d   :  { %v2399_v20 = vld [vmem:[%s3148_s2 + $0x90] sm:$0xff]  }
  0x8f   :  { %1284 = vmatpush1.bf16.msra.mxu0 %v2308_v22  ;;  %1407 = vmatpush1.bf16.msra.mxu1 %v2311_v23  ;;  %v2401_v22 = vld [vmem:[%s3148_s2 + $0xd8] sm:$0xff]  }
  0x90   :  { %1285 = vmatprep.subr.bf16.mxu0 %v2316_v24  ;;  %1408 = vmatprep.subr.bf16.mxu1 %v2319_v25 }
  0x93   :  { %1286 = vmatpush1.bf16.msra.mxu0 %v2314_v26  ;;  %1409 = vmatpush1.bf16.msra.mxu1 %v2317_v27 }
  0x94   :  { %1287 = vmatprep.subr.bf16.mxu0 %v2322_v28  ;;  %1410 = vmatprep.subr.bf16.mxu1 %v2325_v29 }
  0x97   :  { %1288 = vmatpush1.bf16.msra.mxu0 %v2320_v30  ;;  %1411 = vmatpush1.bf16.msra.mxu1 %v2323_v31 }
  0x98   :  { %1289 = vmatprep.subr.bf16.mxu0 %v2328_v32  ;;  %1412 = vmatprep.subr.bf16.mxu1 %v2331_v33 }
  0x9b   :  { %1290 = vmatpush1.bf16.msra.mxu0 %v2326_v34  ;;  %1413 = vmatpush1.bf16.msra.mxu1 %v2329_v35 }
  0x9c   :  { %1291 = vmatprep.subr.bf16.mxu0 %v2334_v36  ;;  %1414 = vmatprep.subr.bf16.mxu1 %v2337_v37 }
  0x9f   :  { %1292 = vmatpush1.bf16.msra.mxu0 %v2332_v38  ;;  %1415 = vmatpush1.bf16.msra.mxu1 %v2335_v39  ;;  %v2402_v38 = vld [vmem:[%s3148_s2 + $0x18] sm:$0xff]  }
  0xa0   :  { %1293 = vmatprep.subr.bf16.mxu0 %v2340_v40  ;;  %1416 = vmatprep.subr.bf16.mxu1 %v2343_v41  ;;  %v2403_v39 = vld [vmem:[%s3148_s2 + $0x98] sm:$0xff]   ;;  %v2404_v40 = vld [vmem:[%s3148_s2 + $0x60] sm:$0xff]  }
  0xa1   :  { %v2405_v41 = vld [vmem:[%s3148_s2 + $0xe0] sm:$0xff]  }
  0xa3   :  { %1294 = vmatpush1.bf16.msra.mxu0 %v2338_v42  ;;  %1417 = vmatpush1.bf16.msra.mxu1 %v2341_v43  ;;  %v2406_v42 = vld [vmem:[%s3148_s2 + $0x20] sm:$0xff]  }
  0xa4   :  { %1295 = vmatprep.subr.bf16.mxu0 %v2346_v44  ;;  %1418 = vmatprep.subr.bf16.mxu1 %v2349_v45  ;;  %v2407_v43 = vld [vmem:[%s3148_s2 + $0xa0] sm:$0xff]   ;;  %v2408_v44 = vld [vmem:[%s3148_s2 + $0x68] sm:$0xff]  }
  0xa5   :  { %v2409_v45 = vld [vmem:[%s3148_s2 + $0xe8] sm:$0xff]  }
  0xa7   :  { %1296 = vmatpush1.bf16.msra.mxu0 %v2344_v46  ;;  %1419 = vmatpush1.bf16.msra.mxu1 %v2347_v47  ;;  %v2410_v46 = vld [vmem:[%s3148_s2 + $0x28] sm:$0xff]  }
  0xa8   :  { %1297 = vmatprep.subr.bf16.mxu0 %v2352_v48  ;;  %1420 = vmatprep.subr.bf16.mxu1 %v2355_v49  ;;  %v2411_v47 = vld [vmem:[%s3148_s2 + $0xa8] sm:$0xff]   ;;  %v2412_v48 = vld [vmem:[%s3148_s2 + $0x70] sm:$0xff]  }
  0xa9   :  { %v2413_v49 = vld [vmem:[%s3148_s2 + $0xf0] sm:$0xff]  }
  0xab   :  { %1298 = vmatpush1.bf16.msra.mxu0 %v2350_v50  ;;  %1421 = vmatpush1.bf16.msra.mxu1 %v2353_v51  ;;  %v2414_v50 = vld [vmem:[%s3148_s2 + $0x30] sm:$0xff]  }
  0xac   :  { %1299 = vmatprep.subr.bf16.mxu0 %v2358_v52  ;;  %1422 = vmatprep.subr.bf16.mxu1 %v2361_v53  ;;  %v2415_v51 = vld [vmem:[%s3148_s2 + $0xb0] sm:$0xff]   ;;  %v2416_v52 = vld [vmem:[%s3148_s2 + $0x78] sm:$0xff]  }
  0xad   :  { %v2417_v53 = vld [vmem:[%s3148_s2 + $0xf8] sm:$0xff]  }
  0xaf   :  { %1300 = vmatpush1.bf16.msra.mxu0 %v2356_v54  ;;  %1423 = vmatpush1.bf16.msra.mxu1 %v2359_v55  ;;  %v2418_v54 = vld [vmem:[%s3148_s2 + $0x38] sm:$0xff]  }
  0xb0   :  { %1301 = vmatprep.subr.bf16.mxu0 %v2364_v56  ;;  %1424 = vmatprep.subr.bf16.mxu1 %v2367_v57  ;;  %v2419_v55 = vld [vmem:[%s3148_s2 + $0xb8] sm:$0xff]  }
  0xb3   :  { %1302 = vmatpush1.bf16.msra.mxu0 %v2362_v58  ;;  %1425 = vmatpush1.bf16.msra.mxu1 %v2365_v59 }
  0xb4   :  { %1303 = vmatprep.subr.bf16.mxu0 %v2370_v60  ;;  %1426 = vmatprep.subr.bf16.mxu1 %v2373_v61 }
  0xb7   :  { %1304 = vmatpush1.bf16.msra.mxu0 %v2368_v62  ;;  %1427 = vmatpush1.bf16.msra.mxu1 %v2371_v63 }
  0xb8   :  { %1305 = vmatprep.subr.bf16.mxu0 %v2376_v0  ;;  %1428 = vmatprep.subr.bf16.mxu1 %v2379_v1 }
  0xbb   :  { %1306 = vmatpush1.bf16.msra.mxu0 %v2374_v2  ;;  %1429 = vmatpush1.bf16.msra.mxu1 %v2377_v3 }
  0xbc   :  { %1307 = vmatprep.subr.bf16.mxu0 %v2382_v4  ;;  %1430 = vmatprep.subr.bf16.mxu1 %v2385_v5 }
  0xbf   :  { %1308 = vmatpush1.bf16.msra.mxu0 %v2380_v6  ;;  %1431 = vmatpush1.bf16.msra.mxu1 %v2383_v7 }
  0xc0   :  { %2034 = vmatprep.subr.bf16.mxu0 %v2388_v9  ;;  %2056 = vmatprep.subr.bf16.mxu1 %v2389_v11 }
  0xc2   :  { %1310 = vmatmul.mubr.bf16.vlgmr.msra.gmra.mrb[0].mxu0 %v1808_v8  ;;  %1433 = vmatmul.mubr.bf16.vlgmr.msra.gmra.mrb[0].mxu1 %v1808_v8 }
  0xc3   :  { %2035 = vmatpush3.bf16.msra.mxu0 %v2390_v12  ;;  %2057 = vmatpush3.bf16.msra.mxu1 %v2391_v10  ;;  %v1797_v12 = vstv %s3149_s0 }
  0xc4   :  { %2036 = vmatprep.subr.bf16.mxu0 %v2392_v13  ;;  %2058 = vmatprep.subr.bf16.mxu1 %v2393_v14 }
  0xc7   :  { %2037 = vmatpush3.bf16.msra.mxu0 %v2394_v15  ;;  %2059 = vmatpush3.bf16.msra.mxu1 %v2395_v16 }
  0xc8   :  { %2038 = vmatprep.subr.bf16.mxu0 %v2396_v17  ;;  %2060 = vmatprep.subr.bf16.mxu1 %v2397_v18 }
  0xcb   :  { %2039 = vmatpush3.bf16.msra.mxu0 %v2398_v19  ;;  %2061 = vmatpush3.bf16.msra.mxu1 %v2399_v20 }
  0xcc   :  { %2040 = vmatprep.subr.bf16.mxu0 %v2400_v21  ;;  %2062 = vmatprep.subr.bf16.mxu1 %v2401_v22 }
  0xcf   :  { %2041 = vmatpush3.bf16.msra.mxu0 %v2402_v38  ;;  %2063 = vmatpush3.bf16.msra.mxu1 %v2403_v39 }
  0xd0   :  { %2042 = vmatprep.subr.bf16.mxu0 %v2404_v40  ;;  %2064 = vmatprep.subr.bf16.mxu1 %v2405_v41 }
  0xd3   :  { %2043 = vmatpush3.bf16.msra.mxu0 %v2406_v42  ;;  %2065 = vmatpush3.bf16.msra.mxu1 %v2407_v43 }
  0xd4   :  { %2044 = vmatprep.subr.bf16.mxu0 %v2408_v44  ;;  %2066 = vmatprep.subr.bf16.mxu1 %v2409_v45 }
  0xd7   :  { %2045 = vmatpush3.bf16.msra.mxu0 %v2410_v46  ;;  %2067 = vmatpush3.bf16.msra.mxu1 %v2411_v47 }
  0xd8   :  { %2046 = vmatprep.subr.bf16.mxu0 %v2412_v48  ;;  %2068 = vmatprep.subr.bf16.mxu1 %v2413_v49 }
  0xdb   :  { %2047 = vmatpush3.bf16.msra.mxu0 %v2414_v50  ;;  %2069 = vmatpush3.bf16.msra.mxu1 %v2415_v51 }
  0xdc   :  { %2048 = vmatprep.subr.bf16.mxu0 %v2416_v52  ;;  %2070 = vmatprep.subr.bf16.mxu1 %v2417_v53 }
  0xdf   :  { %2049 = vmatpush3.bf16.msra.mxu0 %v2418_v54  ;;  %2071 = vmatpush3.bf16.msra.mxu1 %v2419_v55 }
 0x195   :  { %v1311_v23 = vpop.f32.mrb[0].mxu0  ;;  %v1434_v24 = vpop.f32.mrb[0].mxu1 }
 0x196   :  { %v1441_v25 = vmul.f32 %v1311_v23, %v1311_v23  ;;  %v1313_v26 = vpop.f32.mrb[1].mxu0  ;;  %v1436_v27 = vpop.f32.mrb[1].mxu1  ;;  %v1443_v33 = vmul.f32 %v1434_v24, %v1434_v24 }
 0x197   :  { %v1442_v28 = vmul.f32 %v1313_v26, %v1313_v26  ;;  %v1315_v29 = vpop.f32.mrb[2].mxu0  ;;  %v1438_v30 = vpop.f32.mrb[2].mxu1  ;;  %v1444_v35 = vmul.f32 %v1436_v27, %v1436_v27 }
 0x198   :  { %v1316_v31 = vpop.f32.mrb[3].mxu0  ;;  %v1439_v32 = vpop.f32.mrb[3].mxu1 }
 0x199   :  { %v1445_v34 = vadd.f32 %v1442_v28, %v1441_v25 }
 0x19b   :  { %v1446_v36 = vadd.f32 %v1445_v34, %v1443_v33 }
 0x19d   :  { %v1447_v37 = vadd.f32 %v1446_v36, %v1444_v35 }
 0x19f   :  { %1448 = vadd.xlane.f32.xlu0 %v1447_v37 }
 0x22c   :  { %v1449_v56 = vpop.xlane.xlu0 %1448 }
 0x22d   :  { %v1450_v57 = vadd.f32 1e-12, %v1449_v56 }
 0x22f   :  { %2420 = vrsqrt.f32 %v1450_v57 }
 0x239   :  { %v2421_v58 = vpop.eup %2420 }
 0x23a   :  { %v1453_v59 = vmul.f32 %v2421_v58, %v1313_v26  ;;  %v1455_v60 = vmul.f32 %v2421_v58, %v1436_v27  ;;  %v1452_v61 = vmul.f32 %v2421_v58, %v1311_v23  ;;  %v1454_v62 = vmul.f32 %v2421_v58, %v1434_v24 }
 0x23c   :  { %v1457_v63 = vpack.c.bf16 %v1453_v59, %v1453_v59  ;;  %v1459_v0 = vpack.c.bf16 %v1455_v60, %v1455_v60  ;;  %v1456_v1 = vpack.c.bf16 %v1452_v61, %v1452_v61  ;;  %v1458_v2 = vpack.c.bf16 %v1454_v62, %v1454_v62 }
 0x23e   :  { %1748 = vmatprep.mubr.bf16.mxu0 %v1457_v63  ;;  %1788 = vmatprep.mubr.bf16.mxu1 %v1459_v0 }
 0x23f   :  { %1749 = vmatmul.mubr.bf16.vlgmr.msra.gmra.mrb[4].mxu0 %v1456_v1  ;;  %1789 = vmatmul.mubr.bf16.vlgmr.msra.gmra.mrb[4].mxu1 %v1458_v2 }
 0x312   :  { %v2050_v3 = vpop.f32.mrb[4].mxu0  ;;  %v2072_v4 = vpop.f32.mrb[4].mxu1 }
 0x313   :  { %v2051_v5 = vpop.f32.mrb[5].mxu0  ;;  %v2073_v6 = vpop.f32.mrb[5].mxu1 }
 0x314   :  { %v2052_v7 = vadd.f32 %v2051_v5, %v2050_v3  ;;  %v2074_v8 = vadd.f32 %v2073_v6, %v2072_v4  ;;  %v2053_v9 = vpop.f32.mrb[6].mxu0  ;;  %v2075_v11 = vpop.f32.mrb[6].mxu1 }
 0x315   :  { %v2054_v10 = vpop.f32.mrb[7].mxu0  ;;  %v2076_v13 = vpop.f32.mrb[7].mxu1 }
 0x316   :  { %v1791_v14 = vadd.f32 %v2074_v8, %v2052_v7 }
 0x318   :  { %v1798_v15 = vmul.f32 %v1797_v12, %v1791_v14 }
 0x31a   :  { %1799 = vst [vmem:[%s3150_s4] sm:$0xff] %v1798_v15 }

</bundles_post_ra>
